<compile_context>
chip_gen: v5e
topology: v5e:2x2
jax: 0.10.0
libtpu: 0.0.40
codegen_flags: <defaults>
</compile_context>

<pallas_src>
import jax
import jax.numpy as jnp
from jax.experimental import pallas as pl
from jax.experimental.pallas import tpu as pltpu


def _interp_matrix(out_size: int, in_size: int) -> jnp.ndarray:
    """1-D bilinear interpolation matrix, align_corners=True (UpsamplingBilinear2d)."""
    if out_size == 1:
        src = jnp.zeros((1,), dtype=jnp.float32)
    else:
        src = jnp.arange(out_size, dtype=jnp.float32) * (
            (in_size - 1) / (out_size - 1)
        )
    i0 = jnp.clip(jnp.floor(src).astype(jnp.int32), 0, in_size - 1)
    i1 = jnp.minimum(i0 + 1, in_size - 1)
    frac = src - i0.astype(jnp.float32)
    cols = jnp.arange(in_size, dtype=jnp.int32)
    w = (cols[None, :] == i0[:, None]).astype(jnp.float32) * (1.0 - frac)[:, None] + (
        cols[None, :] == i1[:, None]
    ).astype(jnp.float32) * frac[:, None]
    return w  # (out_size, in_size)


def _fvp_kernel(x_ref, wwT_ref, wh_ref, prog_ref, o_ref):
    # x_ref:    (Nb*C*H_in, W_in)   flattened rows of Nb images (all C channels)
    # wwT_ref:  (W_in, S)           column-interp matrix, transposed
    # wh_ref:   (S, H_in)           row-interp matrix
    # prog_ref: (C, S, S)           full program (resident across grid steps)
    # o_ref:    (Nb, C, S, S)       output block
    nb, c, s, _ = o_ref.shape
    h_in = wh_ref.shape[1]
    b = nb * c

    x = x_ref[...].astype(jnp.float32)                               # (b*H_in, W_in)

    # (1) Width interpolation: one big-M matmul; lane dim = S (upsampled axis).
    t = jnp.dot(x, wwT_ref[...], preferred_element_type=jnp.float32)  # (b*H_in, S)
    t3 = t.reshape(b, h_in, s)                                        # leading split only

    # (2) Height interpolation: batched matmul over the b images in this block.
    wh_b = jnp.broadcast_to(wh_ref[...][None], (b, s, h_in))
    up = jnp.einsum(
        "bih,bhs->bis", wh_b, t3, preferred_element_type=jnp.float32
    )                                                                 # (b, S, S)

    # (3) Add the per-channel program (broadcast over Nb) and store.
    out = up.reshape(nb, c, s, s) + prog_ref[...][None]
    o_ref[...] = out.astype(o_ref.dtype)


def fully_visual_prompt(
    x: jnp.ndarray, program: jnp.ndarray, size: int, *, block_n: int = 8
) -> jnp.ndarray:
    """x: (N, C, H_in, W_in); program: (C, size, size). Returns (N, C, size, size)."""
    n, c, h_in, w_in = x.shape
    assert program.shape == (c, size, size)

    # Largest divisor of N that is <= block_n (keeps the grid exact, no padding).
    nb = 1
    for d in range(min(block_n, n), 0, -1):
        if n % d == 0:
            nb = d
            break

    w_h = _interp_matrix(size, h_in)          # (S, H_in)
    w_w_t = _interp_matrix(size, w_in).T      # (W_in, S)

    # Free row-major flatten so the kernel's first matmul needs no in-kernel
    # reshape of the input block.
    x_flat = x.reshape(n * c * h_in, w_in)
    rows_per_block = nb * c * h_in
    grid = (n // nb,)

    out = pl.pallas_call(
        _fvp_kernel,
        out_shape=jax.ShapeDtypeStruct((n, c, size, size), x.dtype),
        grid_spec=pltpu.PrefetchScalarGridSpec(
            num_scalar_prefetch=0,
            grid=grid,
            in_specs=[
                # Block of Nb images (all channels, all input rows), flattened.
                pl.BlockSpec((rows_per_block, w_in), lambda i: (i, 0)),
                # Interp matrices + program: constant block index -> fetched once,
                # stay VMEM-resident across the whole grid.
                pl.BlockSpec((w_in, size), lambda i: (0, 0)),
                pl.BlockSpec((size, h_in), lambda i: (0, 0)),
                pl.BlockSpec((c, size, size), lambda i: (0, 0, 0)),
            ],
            out_specs=pl.BlockSpec((nb, c, size, size), lambda i: (i, 0, 0, 0)),
        ),
        compiler_params=pltpu.CompilerParams(
            # Single batched axis; "parallel" lets v7x's two TensorCores share it.
            dimension_semantics=("parallel",),
        ),
    )(x_flat, w_w_t, w_h, program)
    return out


if __name__ == "__main__":
    # Small deterministic example consistent with the module:
    # 3 input channels (program has 3 channels), upsample 16x16 -> 32x32.
    size = 32
    n, c, h_in, w_in = 4, 3, 16, 16

    key = jax.random.PRNGKey(0)
    kx, kp = jax.random.split(key)
    x = jax.random.normal(kx, (n, c, h_in, w_in), dtype=jnp.float32)
    # nn.Parameter is zero-initialized in the module; use a nonzero program so
    # the broadcast-add path is actually exercised.
    program = jax.random.normal(kp, (c, size, size), dtype=jnp.float32)

    # block_n=2 -> grid=(2,): exercises multiple pipelined grid steps.
    out = fully_visual_prompt(x, program, size, block_n=2)
    out = jax.block_until_ready(out)

    # Pure-JAX reference (same align_corners=True math).
    w_h = _interp_matrix(size, h_in)
    w_w = _interp_matrix(size, w_in)
    ref = jnp.einsum("sh,nchw,tw->ncst", w_h, x, w_w) + program[None]

    assert out.shape == (n, c, size, size)
    assert jnp.allclose(out, ref, atol=1e-5, rtol=1e-5)

    print("KERNEL_OK")
</pallas_src>

<mosaic_0001>
module attributes {stable_mosaic.version = 11 : i64} {
  func.func @_fvp_kernel(%arg0: i32, %arg1: memref<96x16xf32, #tpu.memory_space<vmem>>, %arg2: memref<16x32xf32, #tpu.memory_space<vmem>>, %arg3: memref<32x16xf32, #tpu.memory_space<vmem>>, %arg4: memref<3x32x32xf32, #tpu.memory_space<vmem>>, %arg5: memref<2x3x32x32xf32, #tpu.memory_space<vmem>>) attributes {dimension_semantics = [#tpu.dimension_semantics<parallel>], iteration_bounds = array<i64: 2>, scalar_prefetch = 0 : i64, scratch_operands = 0 : i64, tpu.core_type = #tpu.core_type<tc>, window_params = [{transform_indices = @transform_0, window_bounds = array<i64: 96, 16>}, {pipeline_mode = #tpu.pipeline_mode<synchronous>, transform_indices = @transform_1, window_bounds = array<i64: 16, 32>}, {pipeline_mode = #tpu.pipeline_mode<synchronous>, transform_indices = @transform_2, window_bounds = array<i64: 32, 16>}, {pipeline_mode = #tpu.pipeline_mode<synchronous>, transform_indices = @transform_3, window_bounds = array<i64: 3, 32, 32>}, {transform_indices = @transform_4, window_bounds = array<i64: 2, 3, 32, 32>}]} {
    %c0 = arith.constant 0 : index
    %c0_0 = arith.constant 0 : index
    %0 = vector.load %arg1[%c0, %c0_0] : memref<96x16xf32, #tpu.memory_space<vmem>>, vector<96x16xf32>
    %c0_1 = arith.constant 0 : index
    %c0_2 = arith.constant 0 : index
    %1 = vector.load %arg2[%c0_1, %c0_2] : memref<16x32xf32, #tpu.memory_space<vmem>>, vector<16x32xf32>
    %cst = arith.constant dense<0.000000e+00> : vector<96x32xf32>
    %2 = tpu.matmul %0, %1, %cst {dimension_numbers = #tpu.dot_dimension_numbers<[1], [0], [0], [1], [0, 0, 1, 1], [], []>} : vector<96x16xf32>, vector<16x32xf32>, vector<96x32xf32> -> vector<96x32xf32>
    %3 = vector.shape_cast %2 : vector<96x32xf32> to vector<6x16x32xf32>
    %c0_3 = arith.constant 0 : index
    %c0_4 = arith.constant 0 : index
    %4 = vector.load %arg3[%c0_3, %c0_4] : memref<32x16xf32, #tpu.memory_space<vmem>>, vector<32x16xf32>
    %5 = vector.shape_cast %4 : vector<32x16xf32> to vector<1x32x16xf32>
    %6 = vector.shape_cast %5 : vector<1x32x16xf32> to vector<1x32x16xf32>
    %7 = vector.broadcast %6 : vector<1x32x16xf32> to vector<6x32x16xf32>
    "tpu.trace_start"() <{level = 10 : i32, message = "bih,bhs->bis"}> : () -> ()
    %cst_5 = arith.constant dense<0.000000e+00> : vector<6x32x32xf32>
    %8 = tpu.matmul %7, %3, %cst_5 {dimension_numbers = #tpu.dot_dimension_numbers<[2], [1], [1], [2], [0, 0, 0, 1, 1, 2], [0], [0]>} : vector<6x32x16xf32>, vector<6x16x32xf32>, vector<6x32x32xf32> -> vector<6x32x32xf32>
    "tpu.trace_stop"() : () -> ()
    %9 = vector.shape_cast %8 : vector<6x32x32xf32> to vector<2x3x32x32xf32>
    %c0_6 = arith.constant 0 : index
    %c0_7 = arith.constant 0 : index
    %c0_8 = arith.constant 0 : index
    %10 = vector.load %arg4[%c0_6, %c0_7, %c0_8] : memref<3x32x32xf32, #tpu.memory_space<vmem>>, vector<3x32x32xf32>
    %11 = vector.shape_cast %10 : vector<3x32x32xf32> to vector<1x3x32x32xf32>
    %12 = vector.broadcast %11 : vector<1x3x32x32xf32> to vector<2x3x32x32xf32>
    %13 = arith.addf %9, %12 : vector<2x3x32x32xf32>
    %c0_9 = arith.constant 0 : index
    %c0_10 = arith.constant 0 : index
    %c0_11 = arith.constant 0 : index
    %c0_12 = arith.constant 0 : index
    %14 = vector.load %arg5[%c0_9, %c0_10, %c0_11, %c0_12] : memref<2x3x32x32xf32, #tpu.memory_space<vmem>>, vector<2x3x32x32xf32>
    tpu.vector_store %arg5[%c0_9, %c0_10, %c0_11, %c0_12], %13 {strides = array<i32>} : memref<2x3x32x32xf32, #tpu.memory_space<vmem>>, vector<2x3x32x32xf32>,
    return
  }
  func.func @transform_0(%arg0: i32) -> (i32, i32) {
    %c0_i32 = arith.constant 0 : i32
    %c0_i32_0 = arith.constant 0 : i32
    return %arg0, %c0_i32 : i32, i32
  }
  func.func @transform_1(%arg0: i32) -> (i32, i32) {
    %c0_i32 = arith.constant 0 : i32
    %c0_i32_0 = arith.constant 0 : i32
    %c0_i32_1 = arith.constant 0 : i32
    return %c0_i32, %c0_i32_0 : i32, i32
  }
  func.func @transform_2(%arg0: i32) -> (i32, i32) {
    %c0_i32 = arith.constant 0 : i32
    %c0_i32_0 = arith.constant 0 : i32
    %c0_i32_1 = arith.constant 0 : i32
    return %c0_i32, %c0_i32_0 : i32, i32
  }
  func.func @transform_3(%arg0: i32) -> (i32, i32, i32) {
    %c0_i32 = arith.constant 0 : i32
    %c0_i32_0 = arith.constant 0 : i32
    %c0_i32_1 = arith.constant 0 : i32
    %c0_i32_2 = arith.constant 0 : i32
    return %c0_i32, %c0_i32_0, %c0_i32_1 : i32, i32, i32
  }
  func.func @transform_4(%arg0: i32) -> (i32, i32, i32, i32) {
    %c0_i32 = arith.constant 0 : i32
    %c0_i32_0 = arith.constant 0 : i32
    %c0_i32_1 = arith.constant 0 : i32
    %c0_i32_2 = arith.constant 0 : i32
    return %arg0, %c0_i32, %c0_i32_0, %c0_i32_1 : i32, i32, i32, i32
  }
}

</mosaic_0001>

<bundles_post_ra>
// kernel: tpu_custom_call.1
= control target key start
LH: loop header
LB: loop body
LE: loop exit
PB: predicated region body
PF: predicated region fallthrough
CT: control target
= control target key end

     0   :  { %9 = vsyncpa [#allocation3], 0  ;;  %s1048_s0 = inlined_call_operand.vmem [shape: f32[192,16], index: 0, kind: input, shape index: {}]   ;;  %s1049_s1 = inlined_call_operand.vmem [shape: f32[16,32], index: 1, kind: input, shape index: {}]   ;;  %s1050_s2 = inlined_call_operand.vmem [shape: f32[32,16], index: 2, kind: input, shape index: {}]   ;;  %s1051_s3 = inlined_call_operand.vmem [shape: f32[3,32,32], index: 3, kind: input, shape index: {}]   ;;  %s1052_s4 = inlined_call_operand.hbm [shape: f32[4,3,32,32], index: 4, kind: output, shape index: {}]  }
   0x1   :  { %11 = vsyncpa [#allocation3 + $0x1], 0  ;;  %s819_s15 = smov 0   ;;  %s821_s16 = smov 0  }
   0x2   :  { %s823_s17 = smov 0   ;;  %s825_s18 = smov 0  }
   0x3 LB: > { %s840_s19 = sadd.s32 4294967295, %s790_s18   ;;  %s633_s20 = sadd.s32 4294967294, %s790_s18   ;;  %s790_s18 = sphi %s825_s18, %s1058_s18   ;;  %s786_s17 = sphi %s823_s17, %s1057_s17   ;;  %s782_s16 = sphi %s821_s16, %s1056_s16   ;;  %s778_s15 = sphi %s819_s15, %s1055_s15  }
   0x4   : > { %s844_s21 = sadd.s32 1, %s790_s18   ;;  %s113_s22 = sadd.s32 1, %s786_s17 }
   0x5   : > { %s110_s23 = ssub.s32 %s790_s18, %s844_s21  ;;  %p123_p0 = scmp.ne.s32.totalorder %s786_s17, %s782_s16 }
   0x6   : > { %p111_p1 = scmp.eq.s32.totalorder %s110_s23, 0  ;;  %p124_p2 = scmp.eq.s32.totalorder %s840_s19, 1 }
   0x7   : > { %p129_p3 = scmp.ne.s32.totalorder %s782_s16, %s778_s15  ;;  %p130_p4 = scmp.eq.s32.totalorder %s633_s20, 1 }
   0x8   : > { %s855_s24 = scalar_select %p111_p1, %s786_s17, %s113_s22  }
   0x9   : > { %p857_p5 = por %p124_p2, %p123_p0  ;;  %p861_p6 = por %p130_p4, %p129_p3 }
   0xa   : > { %p636_p7 = scmp.ge.s32.totalorder %s790_s18, 1  ;;  %p166_p8 = scmp.lt.s32.totalorder %s790_s18, 3 }
   0xc   : > { %p167_p9 = pnand %p636_p7, %p166_p8 }
   0xd   : > { %s192_s5 = smul.u32 (!%p167_p9), 12, %s840_s19  ;;  %s189_s27 = sand.u32 (!%p167_p9), 1, %s782_s16  }
   0xe   : > { %170 = sbr.rel (%p167_p9) target bundleno = 387 (0x183), region = 36  ;;  %s748_s8 = scalar_lea.hbm (!%p167_p9), %s1052_s4, 384 }
   0xf   : > { %p193_p10 = scmp.lt.s32.totalorder (!%p167_p9), %s192_s5, 23  ;;  %s685_s28 = smul.u32 (!%p167_p9), 192, %s189_s27 }
  0x10   : > { %s686_s13 = smul.u32 (!%p167_p9), 192, %s840_s19  ;;  %s555_s19 = scalar_lea.sflag (!%p167_p9), [#allocation3], %s189_s27 }
  0x12   : > { %s567_s22 = scalar_lea.hbm (!%p167_p9), %s1052_s4, %s686_s13 }
  0x13   : > { %v212_v0 = vld [vmem:[%s1049_s1 + $0x8] sm:$0xff]  ;;  %v211_v1 = vld [vmem:[%s1049_s1] sm:$0xff]  ;;  %s1060_s5 = smov (!%p193_p10, %s192_s5), 23  ;;  %vm213_vm0 = vcmask 130048   ;;  %v305_v21 = vld [vmem:[%s1050_s2 + $0x10] sm:$0xff]  ;;  %vm529_vm1 = vcmask 261120  }
  0x14   : > { %264 = vmatpush.msra.mxu0 %v212_v0  ;;  %681 = vmatpush.msra.mxu3 %v212_v0  ;;  %s637_s6 = sshll.u32 %s1060_s5, 3  ;;  %v303_v16 = vld [vmem:[%s1050_s2] sm:$0xff]  ;;  %v304_v18 = vld [vmem:[%s1050_s2 + $0x8] sm:$0xff]  ;;  %v306_v23 = vld [vmem:[%s1050_s2 + $0x18] sm:$0xff]  ;;  %s931_s5 = scalar_lea.vmem [#allocation2], %s685_s28 }
  0x15   : > { %679 = vmatpush.msra.mxu1 %v212_v0  ;;  %680 = vmatpush.msra.mxu2 %v212_v0  ;;  %s196_s9 = scalar_lea.vmem %s1048_s0, %s637_s6  ;;  %v493_v30 = vld [vmem:[%s1051_s3] sm:$0xff]  ;;  %v494_v34 = vld [vmem:[%s1051_s3 + $0x8] sm:$0xff]  ;;  %v495_v37 = vld [vmem:[%s1051_s3 + $0x10] sm:$0xff]  ;;  %s568_s23 = sshll.u32 %s931_s5, 4  ;;  %s569_s23 = int_to_ptr.vmem [resolvable:$true] %s568_s23 }
  0x16   : > { %265 = vmatpush.msra.mxu0 %v211_v1  ;;  %684 = vmatpush.msra.mxu3 %v211_v1  ;;  %v199_v2 = vld [vmem:[%s196_s9] sm:$0xff]  ;;  %v200_v3 = vld [vmem:[%s196_s9 + $0x8] sm:$0xff]  ;;  %v210_v4 = vld [vmem:[%s196_s9 + $0x58] sm:$0xff]  ;;  %s570_s28 = sshll.u32 %s567_s22, 4  ;;  %s571_s28 = int_to_ptr.hbm [resolvable:$true] %s570_s28 }
  0x17   : > { %682 = vmatpush.msra.mxu1 %v211_v1  ;;  %683 = vmatpush.msra.mxu2 %v211_v1  ;;  %v201_v5 = vld [vmem:[%s196_s9 + $0x10] sm:$0xff]  ;;  %v208_v6 = vld [vmem:[%s196_s9 + $0x48] sm:$0xff]  ;;  %v202_v7 = vld [vmem:[%s196_s9 + $0x18] sm:$0xff]  ;;  %s742_s29 = sshra.s32 %s571_s28, 4  ;;  %s743_s29 = int_to_ptr.hbm [resolvable:$true] %s742_s29 }
  0x18   : > { %638 = vmatmul.msk.f32.vlgmr.msra.gmra.mxu0 %vm213_vm0, %v199_v2  ;;  %649 = vmatmul.msk.f32.vlgmr.msra.gmra.mxu3 %vm213_vm0, %v210_v4  ;;  %v209_v8 = vld [vmem:[%s196_s9 + $0x50] sm:$0xff]  ;;  %v203_v9 = vld [vmem:[%s196_s9 + $0x20] sm:$0xff]  ;;  %v204_v10 = vld [vmem:[%s196_s9 + $0x28] sm:$0xff]  ;;  %s744_s30 = scalar_lea.hbm %s743_s29, 192  ;;  %p749_p0 = scmp.lt.s32.totalorder %s743_s29, %s1052_s4 }
  0x19   : > { %647 = vmatmul.msk.f32.vlgmr.msra.gmra.mxu1 %vm213_vm0, %v208_v6  ;;  %648 = vmatmul.msk.f32.vlgmr.msra.gmra.mxu2 %vm213_vm0, %v209_v8  ;;  %v205_v11 = vld [vmem:[%s196_s9 + $0x30] sm:$0xff]  ;;  %v206_v12 = vld [vmem:[%s196_s9 + $0x38] sm:$0xff]  ;;  %v207_v13 = vld [vmem:[%s196_s9 + $0x40] sm:$0xff]  ;;  %p745_p11 = scmp.ne.s32.totalorder %s743_s29, %s744_s30  ;;  %p750_p1 = scmp.lt.s32.totalorder %s748_s8, %s744_s30 }
  0x1a   : > { %v497_v39 = vld [vmem:[%s1051_s3 + $0x20] sm:$0xff]  ;;  %v496_v43 = vld [vmem:[%s1051_s3 + $0x18] sm:$0xff]  ;;  %v498_v45 = vld [vmem:[%s1051_s3 + $0x28] sm:$0xff] }
  0x1b   : > { %v501_v48 = vld [vmem:[%s1051_s3 + $0x40] sm:$0xff]  ;;  %v499_v49 = vld [vmem:[%s1051_s3 + $0x30] sm:$0xff]  ;;  %v502_v54 = vld [vmem:[%s1051_s3 + $0x48] sm:$0xff]  ;;  %p746_p12 = pnand %p745_p11, %p857_p5  ;;  %p751_p2 = por %p750_p1, %p749_p0 }
  0x1c   : > { %v500_v55 = vld [vmem:[%s1051_s3 + $0x38] sm:$0xff]  ;;  %v503_v62 = vld [vmem:[%s1051_s3 + $0x50] sm:$0xff] }
  0x1d   : > { %p747_p13 = pneg %p746_p12 }
  0x1f   : > { %p752_p3 = pnand %p751_p2, %p747_p13 }
  0x20   : > { %639 = vmatmul.msk.f32.gmra.mxu0 %vm213_vm0, %v200_v3  ;;  %v504_v3 = vld [vmem:[%s1051_s3 + $0x58] sm:$0xff] }
  0x28   : > { %640 = vmatmul.msk.f32.gmra.mxu0 %vm213_vm0, %v201_v5 }
  0x30   : > { %641 = vmatmul.msk.f32.gmra.mxu0 %vm213_vm0, %v202_v7 }
  0x38   : > { %642 = vmatmul.msk.f32.gmra.mxu0 %vm213_vm0, %v203_v9 }
  0x40   : > { %643 = vmatmul.msk.f32.gmra.mxu0 %vm213_vm0, %v204_v10 }
  0x48   : > { %644 = vmatmul.msk.f32.gmra.mxu0 %vm213_vm0, %v205_v11 }
  0x50   : > { %645 = vmatmul.msk.f32.gmra.mxu0 %vm213_vm0, %v206_v12 }
  0x58   : > { %646 = vmatmul.msk.f32.gmra.mxu0 %vm213_vm0, %v207_v13 }
  0x95   : > { %v267_v14 = vpop.f32.mrf.mxu0 }
  0x96   : > { %v294_v20 = vpop.f32.mrf.mxu1 }
  0x9b   : > { %v300_v25 = vpop.f32.mrf.mxu3 }
  0x9c   : > { %v297_v26 = vpop.f32.mrf.mxu2 }
  0x9d   : > { %v270_v15 = vpop.f32.mrf.mxu0 }
  0x9e   : > { %333 = vmatpush.msrb.mxu1 %v270_v15 }
  0xa0   : > { %334 = vmatpush.msrb.mxu1 %v267_v14 }
  0xa1   : > { %650 = vmatmul.msk.f32.vlgmr.msrb.gmra.mxu1 %vm213_vm0, %v303_v16 }
  0xa5   : > { %v273_v17 = vpop.f32.mrf.mxu0 }
  0xa9   : > { %651 = vmatmul.msk.f32.gmra.mxu1 %vm213_vm0, %v304_v18 }
  0xad   : > { %v276_v19 = vpop.f32.mrf.mxu0 }
  0xae   : > { %362 = vmatpush.msrb.mxu2 %v276_v19 }
  0xb0   : > { %363 = vmatpush.msrb.mxu2 %v273_v17 }
  0xb1   : > { %654 = vmatmul.msk.f32.vlgmr.msrb.gmra.mxu2 %vm213_vm0, %v303_v16  ;;  %652 = vmatmul.msk.f32.gmra.mxu1 %vm213_vm0, %v305_v21 }
  0xb2   : > { %449 = vmatpush.msra.mxu2 %v294_v20 }
  0xb5   : > { %v279_v22 = vpop.f32.mrf.mxu0 }
  0xb9   : > { %655 = vmatmul.msk.f32.gmra.mxu2 %vm213_vm0, %v304_v18  ;;  %653 = vmatmul.msk.f32.gmra.mxu1 %vm213_vm0, %v306_v23 }
  0xbd   : > { %v282_v24 = vpop.f32.mrf.mxu0 }
  0xbe   : > { %391 = vmatpush.msrb.mxu3 %v282_v24 }
  0xc0   : > { %392 = vmatpush.msrb.mxu3 %v279_v22 }
  0xc1   : > { %658 = vmatmul.msk.f32.vlgmr.msrb.gmra.mxu3 %vm213_vm0, %v303_v16  ;;  %656 = vmatmul.msk.f32.gmra.mxu2 %vm213_vm0, %v305_v21 }
  0xc2   : > { %478 = vmatpush.msra.mxu3 %v300_v25 }
  0xc4   : > { %479 = vmatpush.msra.mxu3 %v297_v26 }
  0xc5   : > { %v285_v27 = vpop.f32.mrf.mxu0 }
  0xc9   : > { %659 = vmatmul.msk.f32.gmra.mxu3 %vm213_vm0, %v304_v18  ;;  %657 = vmatmul.msk.f32.gmra.mxu2 %vm213_vm0, %v306_v23 }
  0xcd   : > { %v288_v28 = vpop.f32.mrf.mxu0 }
  0xce   : > { %420 = vmatpush.msra.mxu1 %v288_v28 }
  0xd0   : > { %421 = vmatpush.msra.mxu1 %v285_v27 }
  0xd1   : > { %660 = vmatmul.msk.f32.gmra.mxu3 %vm213_vm0, %v305_v21  ;;  %662 = vmatmul.msk.f32.vlgmr.msra.gmra.mxu1 %vm213_vm0, %v303_v16 }
  0xd5   : > { %v291_v29 = vpop.f32.mrf.mxu0 }
  0xd6   : > { %450 = vmatpush.msra.mxu2 %v291_v29 }
  0xd7   : > { %666 = vmatmul.msk.f32.vlgmr.msra.gmra.mxu2 %vm213_vm0, %v303_v16 }
  0xd9   : > { %661 = vmatmul.msk.f32.gmra.mxu3 %vm213_vm0, %v306_v23  ;;  %663 = vmatmul.msk.f32.gmra.mxu1 %vm213_vm0, %v304_v18 }
  0xdf   : > { %667 = vmatmul.msk.f32.gmra.mxu2 %vm213_vm0, %v304_v18 }
  0xe1   : > { %670 = vmatmul.msk.f32.vlgmr.msra.gmra.mxu3 %vm213_vm0, %v303_v16  ;;  %664 = vmatmul.msk.f32.gmra.mxu1 %vm213_vm0, %v305_v21 }
  0xe7   : > { %668 = vmatmul.msk.f32.gmra.mxu2 %vm213_vm0, %v305_v21 }
  0xe9   : > { %671 = vmatmul.msk.f32.gmra.mxu3 %vm213_vm0, %v304_v18  ;;  %665 = vmatmul.msk.f32.gmra.mxu1 %vm213_vm0, %v306_v23 }
  0xef   : > { %669 = vmatmul.msk.f32.gmra.mxu2 %vm213_vm0, %v306_v23 }
  0xf1   : > { %672 = vmatmul.msk.f32.gmra.mxu3 %vm213_vm0, %v305_v21 }
  0xf9   : > { %673 = vmatmul.msk.f32.gmra.mxu3 %vm213_vm0, %v306_v23 }
 0x11e   : > { %v336_v31 = vpop.f32.mrf.mxu1 }
 0x11f   : > { %v505_v32 = vadd.f32 %v493_v30, %v336_v31 }
 0x121   : > { %530 = vst.msk [vmem:[%s931_s5] sm:$0xff] %vm529_vm1, %v505_v32 }
 0x126   : > { %v339_v33 = vpop.f32.mrf.mxu1 }
 0x127   : > { %v506_v35 = vadd.f32 %v494_v34, %v339_v33 }
 0x129   : > { %531 = vst.msk [vmem:[%s931_s5 + $0x8] sm:$0xff] %vm529_vm1, %v506_v35 }
 0x12e   : > { %v342_v36 = vpop.f32.mrf.mxu1 }
 0x12f   : > { %v507_v38 = vadd.f32 %v495_v37, %v342_v36 }
 0x131   : > { %532 = vst.msk [vmem:[%s931_s5 + $0x10] sm:$0xff] %vm529_vm1, %v507_v38 }
 0x134   : > { %v365_v40 = vpop.f32.mrf.mxu2 }
 0x135   : > { %v509_v41 = vadd.f32 %v497_v39, %v365_v40 }
 0x136   : > { %v345_v42 = vpop.f32.mrf.mxu1 }
 0x137   : > { %534 = vst.msk [vmem:[%s931_s5 + $0x20] sm:$0xff] %vm529_vm1, %v509_v41  ;;  %v508_v44 = vadd.f32 %v496_v43, %v345_v42 }
 0x139   : > { %533 = vst.msk [vmem:[%s931_s5 + $0x18] sm:$0xff] %vm529_vm1, %v508_v44 }
 0x13c   : > { %v368_v46 = vpop.f32.mrf.mxu2 }
 0x13d   : > { %v510_v47 = vadd.f32 %v498_v45, %v368_v46 }
 0x13f   : > { %535 = vst.msk [vmem:[%s931_s5 + $0x28] sm:$0xff] %vm529_vm1, %v510_v47 }
 0x144   : > { %v394_v50 = vpop.f32.mrf.mxu3  ;;  %v371_v51 = vpop.f32.mrf.mxu2 }
 0x145   : > { %v513_v52 = vadd.f32 %v501_v48, %v394_v50  ;;  %v511_v53 = vadd.f32 %v499_v49, %v371_v51 }
 0x147   : > { %538 = vst.msk [vmem:[%s931_s5 + $0x40] sm:$0xff] %vm529_vm1, %v513_v52 }
 0x148   : > { %536 = vst.msk [vmem:[%s931_s5 + $0x30] sm:$0xff] %vm529_vm1, %v511_v53 }
 0x14c   : > { %v397_v56 = vpop.f32.mrf.mxu3  ;;  %v374_v57 = vpop.f32.mrf.mxu2 }
 0x14d   : > { %v514_v58 = vadd.f32 %v502_v54, %v397_v56  ;;  %v512_v59 = vadd.f32 %v500_v55, %v374_v57 }
 0x14e   : > { %v423_v60 = vpop.f32.mrf.mxu1 }
 0x14f   : > { %539 = vst.msk [vmem:[%s931_s5 + $0x48] sm:$0xff] %vm529_vm1, %v514_v58  ;;  %v517_v61 = vadd.f32 %v493_v30, %v423_v60 }
 0x150   : > { %537 = vst.msk [vmem:[%s931_s5 + $0x38] sm:$0xff] %vm529_vm1, %v512_v59 }
 0x151   : > { %542 = vst.msk [vmem:[%s931_s5 + $0x60] sm:$0xff] %vm529_vm1, %v517_v61 }
 0x154   : > { %v400_v63 = vpop.f32.mrf.mxu3 }
 0x155   : > { %v515_v0 = vadd.f32 %v503_v62, %v400_v63 }
 0x156   : > { %v426_v1 = vpop.f32.mrf.mxu1 }
 0x157   : > { %540 = vst.msk [vmem:[%s931_s5 + $0x50] sm:$0xff] %vm529_vm1, %v515_v0  ;;  %v518_v2 = vadd.f32 %v494_v34, %v426_v1 }
 0x159   : > { %543 = vst.msk [vmem:[%s931_s5 + $0x68] sm:$0xff] %vm529_vm1, %v518_v2 }
 0x15a   : > { %v452_v4 = vpop.f32.mrf.mxu2 }
 0x15b   : > { %v521_v5 = vadd.f32 %v497_v39, %v452_v4 }
 0x15c   : > { %v403_v6 = vpop.f32.mrf.mxu3 }
 0x15d   : > { %v516_v7 = vadd.f32 %v504_v3, %v403_v6  ;;  %546 = vst.msk [vmem:[%s931_s5 + $0x80] sm:$0xff] %vm529_vm1, %v521_v5 }
 0x15e   : > { %v429_v8 = vpop.f32.mrf.mxu1 }
 0x15f   : > { %541 = vst.msk [vmem:[%s931_s5 + $0x58] sm:$0xff] %vm529_vm1, %v516_v7  ;;  %v519_v9 = vadd.f32 %v495_v37, %v429_v8 }
 0x161   : > { %544 = vst.msk [vmem:[%s931_s5 + $0x70] sm:$0xff] %vm529_vm1, %v519_v9 }
 0x162   : > { %v455_v10 = vpop.f32.mrf.mxu2 }
 0x163   : > { %v522_v11 = vadd.f32 %v498_v45, %v455_v10 }
 0x164   : > { %v481_v12 = vpop.f32.mrf.mxu3 }
 0x165   : > { %v525_v13 = vadd.f32 %v501_v48, %v481_v12  ;;  %547 = vst.msk [vmem:[%s931_s5 + $0x88] sm:$0xff] %vm529_vm1, %v522_v11 }
 0x166   : > { %v432_v14 = vpop.f32.mrf.mxu1 }
 0x167   : > { %550 = vst.msk [vmem:[%s931_s5 + $0xa0] sm:$0xff] %vm529_vm1, %v525_v13  ;;  %v520_v15 = vadd.f32 %v496_v43, %v432_v14 }
 0x169   : > { %545 = vst.msk [vmem:[%s931_s5 + $0x78] sm:$0xff] %vm529_vm1, %v520_v15 }
 0x16a   : > { %v458_v16 = vpop.f32.mrf.mxu2 }
 0x16b   : > { %v523_v17 = vadd.f32 %v499_v49, %v458_v16 }
 0x16c   : > { %v484_v18 = vpop.f32.mrf.mxu3 }
 0x16d   : > { %v526_v19 = vadd.f32 %v502_v54, %v484_v18  ;;  %548 = vst.msk [vmem:[%s931_s5 + $0x90] sm:$0xff] %vm529_vm1, %v523_v17 }
 0x16f   : > { %551 = vst.msk [vmem:[%s931_s5 + $0xa8] sm:$0xff] %vm529_vm1, %v526_v19 }
 0x172   : > { %v461_v20 = vpop.f32.mrf.mxu2 }
 0x173   : > { %v524_v21 = vadd.f32 %v500_v55, %v461_v20 }
 0x174   : > { %v487_v22 = vpop.f32.mrf.mxu3 }
 0x175   : > { %v527_v23 = vadd.f32 %v503_v62, %v487_v22  ;;  %549 = vst.msk [vmem:[%s931_s5 + $0x98] sm:$0xff] %vm529_vm1, %v524_v21 }
 0x177   : > { %552 = vst.msk [vmem:[%s931_s5 + $0xb0] sm:$0xff] %vm529_vm1, %v527_v23 }
 0x17c   : > { %v490_v24 = vpop.f32.mrf.mxu3 }
 0x17d   : > { %v528_v25 = vadd.f32 %v504_v3, %v490_v24 }
 0x17f   : > { %553 = vst.msk [vmem:[%s931_s5 + $0xb8] sm:$0xff] %vm529_vm1, %v528_v25 }
 0x180   : > { %755 = shalt.err (!%p752_p3)
}
 0x181   : > { %s792_s27 = smov 128   ;;  %s793_s5 = smov 8  }
 0x182   : > { %687 = dma.vmem_to_hbm [thread:$0]  (%p857_p5), %s569_s23, 3072, %s571_s28, %s555_s19, %s792_s27, %s792_s27, %s793_s5  }
 0x183 PF: > { %p693_p4 = scmp.ge.s32.totalorder %s790_s18, 2  ;;  %s585_s11 = sand.u32 1, %s778_s15  }
 0x184   : > { %s586_s12 = scalar_lea.sflag [#allocation3], %s585_s11 }
 0x185   : > { %p690_p7 = pnand %p693_p4, %p861_p6 }
 0x187   : > { %p691_p8 = pneg %p690_p7 }
 0x189   : > { %773 = dma.done.wait (%p691_p8), %s586_s12, 3072  }
 0x18a   : > { %775 = vsyncadd (%p691_p8), %s586_s12, 4294964224  ;;  %p14_p9 = scmp.ge.s32.totalorder %s844_s21, 4   ;;  %s1055_s15 = smov %s782_s16 }
 0x18b   : > { %s1056_s16 = smov %s786_s17  ;;  %s1057_s17 = smov %s855_s24 }
 0x18c   : > { %s1058_s18 = smov %s844_s21  ;;  %16 = sbr.rel (!%p14_p9) target bundleno = 3 (0x3), region = 71 }
 0x191   :  { %592 = vsyncpa [#allocation3], 1 }
 0x192   :  { %594 = vsyncpa [#allocation3 + $0x1], 1 }

</bundles_post_ra>
